<compile_context>
chip_gen: v7x
topology: tpu7x:2x2x1
jax: 0.10.0
libtpu: 0.0.40
codegen_flags: <defaults>
</compile_context>

<pallas_src>
import jax
import jax.numpy as jnp
from jax import lax
from jax.experimental import pallas as pl
from jax.experimental.pallas import tpu as pltpu

_LANE = 128
_ROW_GRAN = 16            # bf16-friendly sublane granularity
_MAX_ROW_TILE = 256
_VMEM_LIMIT = 48 * 1024 * 1024


def _round_up(n, m):
    return ((n + m - 1) // m) * m


def _row_tile(n):
    return min(_MAX_ROW_TILE, _round_up(max(n, 1), _ROW_GRAN))


def _pad2d(a, rows, cols):
    return jnp.pad(a, ((0, rows - a.shape[0]), (0, cols - a.shape[1])))


# ---------------------------------------------------------------------------
# Kernel 1: per-source-row message computation
#   msg = relu(relu(x @ W1) @ W2) @ Wc
# ---------------------------------------------------------------------------
def _message_kernel(x_ref, w1_ref, w2_ref, wc_ref, o_ref):
    h = jnp.dot(x_ref[...], w1_ref[...], preferred_element_type=jnp.float32)
    h = jnp.maximum(h, 0.0)
    h = jnp.dot(h.astype(jnp.bfloat16), w2_ref[...],
                preferred_element_type=jnp.float32)
    h = jnp.maximum(h, 0.0)
    # TODO(synk): F.dropout(p=dropout) after the encoder is an identity in eval mode.
    msg = jnp.dot(h.astype(jnp.bfloat16), wc_ref[...],
                  preferred_element_type=jnp.float32)
    o_ref[...] = msg.astype(o_ref.dtype)


def _message(x, w1, w2, wc, *, tile_rows):
    n, c = x.shape
    hid = w1.shape[1]
    hp = wc.shape[1]
    grid = (n // tile_rows,)
    flops = 2 * n * (c * hid + hid * hid + hid * hp)
    bytes_accessed = 2 * (n * c + c * hid + hid * hid + hid * hp + n * hp)
    return pl.pallas_call(
        _message_kernel,
        out_shape=jax.ShapeDtypeStruct((n, hp), jnp.bfloat16),
        grid_spec=pltpu.PrefetchScalarGridSpec(
            num_scalar_prefetch=0,
            grid=grid,
            in_specs=[
                pl.BlockSpec((tile_rows, c), lambda i: (i, 0)),
                pl.BlockSpec((c, hid), lambda i: (0, 0)),
                pl.BlockSpec((hid, hid), lambda i: (0, 0)),
                pl.BlockSpec((hid, hp), lambda i: (0, 0)),
            ],
            out_specs=pl.BlockSpec((tile_rows, hp), lambda i: (i, 0)),
        ),
        compiler_params=pltpu.CompilerParams(
            dimension_semantics=("parallel",),
            vmem_limit_bytes=_VMEM_LIMIT),
        cost_estimate=pl.CostEstimate(
            flops=int(flops), transcendentals=0,
            bytes_accessed=int(bytes_accessed)),
    )(x, w1, w2, wc)


# ---------------------------------------------------------------------------
# Kernel 2: tiled aggregation (inc @ msg) with f32 accumulator + decoder MLP
# ---------------------------------------------------------------------------
def _make_agg_decoder_kernel(src_axis_of_inc):
    """src_axis_of_inc: which axis of the incidence *tile* is the source axis.
       0 -> tile is [src, tgt] (vertex->edge; incidence stored as [nodes, edges])
       1 -> tile is [tgt, src] (edge->vertex)."""

    def kernel(inc_ref, msg_ref, invdeg_ref, wd1_ref, wd2_ref, o_ref, acc_ref):
        s = pl.program_id(1)

        @pl.when(s == 0)
        def _init():
            acc_ref[...] = jnp.zeros_like(acc_ref)

        inc = inc_ref[...]
        msg = msg_ref[...]
        if src_axis_of_inc == 0:
            # inc: [tile_src, tile_tgt], msg: [tile_src, hp] -> contract source axis.
            part = lax.dot_general(inc, msg, (((0,), (0,)), ((), ())),
                                   preferred_element_type=jnp.float32)
        else:
            # inc: [tile_tgt, tile_src], msg: [tile_src, hp]
            part = jnp.dot(inc, msg, preferred_element_type=jnp.float32)
        acc_ref[...] += part

        @pl.when(s == pl.num_programs(1) - 1)
        def _finalize():
            # Conv: aggr_norm with precomputed reciprocal degree, then relu update.
            m = jnp.maximum(acc_ref[...] * invdeg_ref[...], 0.0)
            d = jnp.dot(m.astype(jnp.bfloat16), wd1_ref[...],
                        preferred_element_type=jnp.float32)
            d = jnp.maximum(d, 0.0)
            d = jnp.dot(d.astype(jnp.bfloat16), wd2_ref[...],
                        preferred_element_type=jnp.float32)
            o_ref[...] = jnp.maximum(d, 0.0).astype(o_ref.dtype)

    return kernel


def _aggregate_decode(inc, msg, inv_deg, wd1, wd2, *,
                      src_axis, tile_tgt, tile_src, out_dtype):
    if src_axis == 0:
        n_src, n_tgt = inc.shape
        inc_block = (tile_src, tile_tgt)
        inc_map = lambda t, s: (s, t)
    else:
        n_tgt, n_src = inc.shape
        inc_block = (tile_tgt, tile_src)
        inc_map = lambda t, s: (t, s)
    hid = wd1.shape[0]
    hp = wd2.shape[1]
    grid = (n_tgt // tile_tgt, n_src // tile_src)

    out_bytes = jnp.dtype(out_dtype).itemsize
    flops = 2 * n_tgt * n_src * hid + 2 * n_tgt * (hid * hid + hid * hp)
    bytes_accessed = (2 * (n_tgt * n_src + n_src * hid * grid[0]
                           + hid * hid + hid * hp)
                      + 4 * n_tgt + n_tgt * hp * out_bytes)

    kernel = _make_agg_decoder_kernel(src_axis)
    return pl.pallas_call(
        kernel,
        out_shape=jax.ShapeDtypeStruct((n_tgt, hp), out_dtype),
        grid_spec=pltpu.PrefetchScalarGridSpec(
            num_scalar_prefetch=0,
            grid=grid,
            in_specs=[
                pl.BlockSpec(inc_block, inc_map),
                pl.BlockSpec((tile_src, hid), lambda t, s: (s, 0)),
                pl.BlockSpec((tile_tgt, 1), lambda t, s: (t, 0)),
                pl.BlockSpec((hid, hid), lambda t, s: (0, 0)),
                pl.BlockSpec((hid, hp), lambda t, s: (0, 0)),
            ],
            out_specs=pl.BlockSpec((tile_tgt, hp), lambda t, s: (t, 0)),
            scratch_shapes=[pltpu.VMEM((tile_tgt, hp), jnp.float32)],
        ),
        compiler_params=pltpu.CompilerParams(
            dimension_semantics=("parallel", "arbitrary"),
            vmem_limit_bytes=_VMEM_LIMIT),
        cost_estimate=pl.CostEstimate(
            flops=int(flops), transcendentals=0,
            bytes_accessed=int(bytes_accessed)),
    )(inc, msg, inv_deg, wd1, wd2)


# ---------------------------------------------------------------------------
# Layer wrapper
# ---------------------------------------------------------------------------
@jax.jit
def allset_layer(x, incidence_1, params):
    """AllSetLayer forward (eval mode).

    x           : [n_nodes, in_channels]  float32
    incidence_1 : [n_nodes, n_edges]      dense 0/1 float32
    params      : dict of f32 weights for vertex2edge / edge2vertex blocks.
    """
    n_nodes, in_ch = x.shape
    n_edges = incidence_1.shape[1]
    hidden = params["v2e_wd2"].shape[1]

    cp = _round_up(in_ch, _LANE)
    hp = _round_up(hidden, _LANE)
    tile_n = _row_tile(n_nodes)
    tile_e = _row_tile(n_edges)
    n_nodes_p = _round_up(n_nodes, tile_n)
    n_edges_p = _round_up(n_edges, tile_e)

    inc = incidence_1.astype(jnp.float32)
    # Reciprocal row-degrees of each aggregation matrix, precomputed once.
    # (Guarded against zero degree; the torch reference would produce NaN there.)
    inv_deg_e = 1.0 / jnp.maximum(jnp.sum(inc, axis=0), 1.0)   # per hyperedge
    inv_deg_v = 1.0 / jnp.maximum(jnp.sum(inc, axis=1), 1.0)   # per node

    inc_p = _pad2d(inc, n_nodes_p, n_edges_p).astype(jnp.bfloat16)
    x_p = _pad2d(x.astype(jnp.float32), n_nodes_p, cp).astype(jnp.bfloat16)
    inv_deg_e_p = _pad2d(inv_deg_e[:, None], n_edges_p, 1).astype(jnp.float32)
    inv_deg_v_p = _pad2d(inv_deg_v[:, None], n_nodes_p, 1).astype(jnp.float32)

    def pad_w(w, rows, cols):
        return _pad2d(w.astype(jnp.float32), rows, cols).astype(jnp.bfloat16)

    p = params
    v2e_w1 = pad_w(p["v2e_we1"], cp, hp)
    v2e_w2 = pad_w(p["v2e_we2"], hp, hp)
    v2e_wc = pad_w(p["v2e_wc"], hp, hp)
    v2e_wd1 = pad_w(p["v2e_wd1"], hp, hp)
    v2e_wd2 = pad_w(p["v2e_wd2"], hp, hp)
    e2v_w1 = pad_w(p["e2v_we1"], hp, hp)
    e2v_w2 = pad_w(p["e2v_we2"], hp, hp)
    e2v_wc = pad_w(p["e2v_wc"], hp, hp)
    e2v_wd1 = pad_w(p["e2v_wd1"], hp, hp)
    e2v_wd2 = pad_w(p["e2v_wd2"], hp, hp)

    # ---- vertex -> edge block (aggregation matrix = incidence^T, never materialized)
    msg_v = _message(x_p, v2e_w1, v2e_w2, v2e_wc, tile_rows=tile_n)
    e = _aggregate_decode(inc_p, msg_v, inv_deg_e_p, v2e_wd1, v2e_wd2,
                          src_axis=0, tile_tgt=tile_e, tile_src=tile_n,
                          out_dtype=jnp.bfloat16)
    # TODO(synk): inter-block F.dropout(p=dropout) is an identity in eval mode.

    # ---- edge -> vertex block (aggregation matrix = incidence)
    msg_e = _message(e, e2v_w1, e2v_w2, e2v_wc, tile_rows=tile_e)
    v = _aggregate_decode(inc_p, msg_e, inv_deg_v_p, e2v_wd1, e2v_wd2,
                          src_axis=1, tile_tgt=tile_n, tile_src=tile_e,
                          out_dtype=jnp.float32)
    return v[:n_nodes, :hidden]


# ---------------------------------------------------------------------------
# Parameters / demo
# ---------------------------------------------------------------------------
def _xavier(key, shape):
    fan_in, fan_out = shape
    bound = jnp.sqrt(6.0 / (fan_in + fan_out))
    return jax.random.uniform(key, shape, jnp.float32, -bound, bound)


def make_params(key, in_channels, hidden_channels):
    ks = jax.random.split(key, 10)
    C, H = in_channels, hidden_channels
    return {
        # vertex2edge block (in_channels -> hidden)
        "v2e_we1": _xavier(ks[0], (C, H)),
        "v2e_we2": _xavier(ks[1], (H, H)),
        "v2e_wc":  _xavier(ks[2], (H, H)),
        "v2e_wd1": _xavier(ks[3], (H, H)),
        "v2e_wd2": _xavier(ks[4], (H, H)),
        # edge2vertex block (hidden -> hidden)
        "e2v_we1": _xavier(ks[5], (H, H)),
        "e2v_we2": _xavier(ks[6], (H, H)),
        "e2v_wc":  _xavier(ks[7], (H, H)),
        "e2v_wd1": _xavier(ks[8], (H, H)),
        "e2v_wd2": _xavier(ks[9], (H, H)),
    }


if __name__ == "__main__":
    key = jax.random.PRNGKey(0)
    k_x, k_b, k_w = jax.random.split(key, 3)

    n_nodes, n_edges = 16, 8
    in_channels, hidden_channels = 4, 32

    x = jax.random.normal(k_x, (n_nodes, in_channels), jnp.float32)

    # Random 0/1 incidence; guarantee every node and hyperedge has degree >= 1.
    inc = (jax.random.uniform(k_b, (n_nodes, n_edges)) < 0.3).astype(jnp.float32)
    rows = jnp.arange(n_nodes)
    inc = inc.at[rows, rows % n_edges].set(1.0)

    params = make_params(k_w, in_channels, hidden_channels)

    out = allset_layer(x, inc, params)
    out = jax.block_until_ready(out)

    assert out.shape == (n_nodes, hidden_channels)
    assert bool(jnp.all(jnp.isfinite(out)))
    print("KERNEL_OK")
</pallas_src>

<mosaic_0001>
module attributes {stable_mosaic.version = 11 : i64} {
  func.func @_message_kernel(%arg0: i32, %arg1: memref<16x128xbf16, #tpu.memory_space<vmem>>, %arg2: memref<128x128xbf16, #tpu.memory_space<vmem>>, %arg3: memref<128x128xbf16, #tpu.memory_space<vmem>>, %arg4: memref<128x128xbf16, #tpu.memory_space<vmem>>, %arg5: memref<16x128xbf16, #tpu.memory_space<vmem>>) attributes {dimension_semantics = [#tpu.dimension_semantics<parallel>], iteration_bounds = array<i64: 1>, scalar_prefetch = 0 : i64, scratch_operands = 0 : i64, tpu.core_type = #tpu.core_type<tc>, window_params = [{transform_indices = @transform_0, window_bounds = array<i64: 16, 128>}, {pipeline_mode = #tpu.pipeline_mode<synchronous>, transform_indices = @transform_1, window_bounds = array<i64: 128, 128>}, {pipeline_mode = #tpu.pipeline_mode<synchronous>, transform_indices = @transform_2, window_bounds = array<i64: 128, 128>}, {pipeline_mode = #tpu.pipeline_mode<synchronous>, transform_indices = @transform_3, window_bounds = array<i64: 128, 128>}, {transform_indices = @transform_4, window_bounds = array<i64: 16, 128>}]} {
    %c0 = arith.constant 0 : index
    %c0_0 = arith.constant 0 : index
    %0 = vector.load %arg1[%c0, %c0_0] : memref<16x128xbf16, #tpu.memory_space<vmem>>, vector<16x128xbf16>
    %c0_1 = arith.constant 0 : index
    %c0_2 = arith.constant 0 : index
    %1 = vector.load %arg2[%c0_1, %c0_2] : memref<128x128xbf16, #tpu.memory_space<vmem>>, vector<128x128xbf16>
    %cst = arith.constant dense<0.000000e+00> : vector<16x128xf32>
    %2 = tpu.matmul %0, %1, %cst {dimension_numbers = #tpu.dot_dimension_numbers<[1], [0], [0], [1], [0, 0, 1, 1], [], []>} : vector<16x128xbf16>, vector<128x128xbf16>, vector<16x128xf32> -> vector<16x128xf32>
    %cst_3 = arith.constant 0.000000e+00 : f32
    %3 = vector.broadcast %cst_3 : f32 to vector<16x128xf32>
    %4 = arith.maximumf %2, %3 : vector<16x128xf32>
    %5 = arith.truncf %4 : vector<16x128xf32> to vector<16x128xbf16>
    %c0_4 = arith.constant 0 : index
    %c0_5 = arith.constant 0 : index
    %6 = vector.load %arg3[%c0_4, %c0_5] : memref<128x128xbf16, #tpu.memory_space<vmem>>, vector<128x128xbf16>
    %cst_6 = arith.constant dense<0.000000e+00> : vector<16x128xf32>
    %7 = tpu.matmul %5, %6, %cst_6 {dimension_numbers = #tpu.dot_dimension_numbers<[1], [0], [0], [1], [0, 0, 1, 1], [], []>} : vector<16x128xbf16>, vector<128x128xbf16>, vector<16x128xf32> -> vector<16x128xf32>
    %cst_7 = arith.constant 0.000000e+00 : f32
    %8 = vector.broadcast %cst_7 : f32 to vector<16x128xf32>
    %9 = arith.maximumf %7, %8 : vector<16x128xf32>
    %10 = arith.truncf %9 : vector<16x128xf32> to vector<16x128xbf16>
    %c0_8 = arith.constant 0 : index
    %c0_9 = arith.constant 0 : index
    %11 = vector.load %arg4[%c0_8, %c0_9] : memref<128x128xbf16, #tpu.memory_space<vmem>>, vector<128x128xbf16>
    %cst_10 = arith.constant dense<0.000000e+00> : vector<16x128xf32>
    %12 = tpu.matmul %10, %11, %cst_10 {dimension_numbers = #tpu.dot_dimension_numbers<[1], [0], [0], [1], [0, 0, 1, 1], [], []>} : vector<16x128xbf16>, vector<128x128xbf16>, vector<16x128xf32> -> vector<16x128xf32>
    %13 = arith.truncf %12 : vector<16x128xf32> to vector<16x128xbf16>
    %c0_11 = arith.constant 0 : index
    %c0_12 = arith.constant 0 : index
    %14 = vector.load %arg5[%c0_11, %c0_12] : memref<16x128xbf16, #tpu.memory_space<vmem>>, vector<16x128xbf16>
    tpu.vector_store %arg5[%c0_11, %c0_12], %13 {strides = array<i32>} : memref<16x128xbf16, #tpu.memory_space<vmem>>, vector<16x128xbf16>,
    return
  }
  func.func @transform_0(%arg0: i32) -> (i32, i32) {
    %c0_i32 = arith.constant 0 : i32
    %c0_i32_0 = arith.constant 0 : i32
    return %arg0, %c0_i32 : i32, i32
  }
  func.func @transform_1(%arg0: i32) -> (i32, i32) {
    %c0_i32 = arith.constant 0 : i32
    %c0_i32_0 = arith.constant 0 : i32
    %c0_i32_1 = arith.constant 0 : i32
    return %c0_i32, %c0_i32_0 : i32, i32
  }
  func.func @transform_2(%arg0: i32) -> (i32, i32) {
    %c0_i32 = arith.constant 0 : i32
    %c0_i32_0 = arith.constant 0 : i32
    %c0_i32_1 = arith.constant 0 : i32
    return %c0_i32, %c0_i32_0 : i32, i32
  }
  func.func @transform_3(%arg0: i32) -> (i32, i32) {
    %c0_i32 = arith.constant 0 : i32
    %c0_i32_0 = arith.constant 0 : i32
    %c0_i32_1 = arith.constant 0 : i32
    return %c0_i32, %c0_i32_0 : i32, i32
  }
  func.func @transform_4(%arg0: i32) -> (i32, i32) {
    %c0_i32 = arith.constant 0 : i32
    %c0_i32_0 = arith.constant 0 : i32
    return %arg0, %c0_i32 : i32, i32
  }
}

module attributes {stable_mosaic.version = 11 : i64} {
  func.func @kernel(%arg0: i32, %arg1: i32, %arg2: memref<16x16xbf16, #tpu.memory_space<vmem>>, %arg3: memref<16x128xbf16, #tpu.memory_space<vmem>>, %arg4: memref<16x1xf32, #tpu.memory_space<vmem>>, %arg5: memref<128x128xbf16, #tpu.memory_space<vmem>>, %arg6: memref<128x128xbf16, #tpu.memory_space<vmem>>, %arg7: memref<16x128xbf16, #tpu.memory_space<vmem>>, %arg8: memref<16x128xf32, #tpu.memory_space<vmem>>) attributes {dimension_semantics = [#tpu.dimension_semantics<parallel>, #tpu.dimension_semantics<arbitrary>], iteration_bounds = array<i64: 1, 1>, scalar_prefetch = 0 : i64, scratch_operands = 1 : i64, tpu.core_type = #tpu.core_type<tc>, window_params = [{transform_indices = @transform_0, window_bounds = array<i64: 16, 16>}, {transform_indices = @transform_1, window_bounds = array<i64: 16, 128>}, {transform_indices = @transform_2, window_bounds = array<i64: 16, 1>}, {pipeline_mode = #tpu.pipeline_mode<synchronous>, transform_indices = @transform_3, window_bounds = array<i64: 128, 128>}, {pipeline_mode = #tpu.pipeline_mode<synchronous>, transform_indices = @transform_4, window_bounds = array<i64: 128, 128>}, {transform_indices = @transform_5, window_bounds = array<i64: 16, 128>}]} {
    %c0_i32 = arith.constant 0 : i32
    %0 = arith.cmpi eq, %arg1, %c0_i32 : i32
    %1 = arith.extui %0 : i1 to i32
    %c0_i32_0 = arith.constant 0 : i32
    %2 = arith.cmpi ne, %1, %c0_i32_0 : i32
    scf.if %2 {
      %cst_10 = arith.constant 0.000000e+00 : f32
      %12 = vector.broadcast %cst_10 : f32 to vector<16x128xf32>
      %c0_11 = arith.constant 0 : index
      %c0_12 = arith.constant 0 : index
      %13 = vector.load %arg8[%c0_11, %c0_12] : memref<16x128xf32, #tpu.memory_space<vmem>>, vector<16x128xf32>
      tpu.vector_store %arg8[%c0_11, %c0_12], %12 {strides = array<i32>} : memref<16x128xf32, #tpu.memory_space<vmem>>, vector<16x128xf32>,
    } else {
    }
    %c0 = arith.constant 0 : index
    %c0_1 = arith.constant 0 : index
    %3 = vector.load %arg2[%c0, %c0_1] : memref<16x16xbf16, #tpu.memory_space<vmem>>, vector<16x16xbf16>
    %c0_2 = arith.constant 0 : index
    %c0_3 = arith.constant 0 : index
    %4 = vector.load %arg3[%c0_2, %c0_3] : memref<16x128xbf16, #tpu.memory_space<vmem>>, vector<16x128xbf16>
    %cst = arith.constant dense<0.000000e+00> : vector<16x128xf32>
    %5 = tpu.matmul %3, %4, %cst {dimension_numbers = #tpu.dot_dimension_numbers<[0], [0], [1], [1], [0, 1, 1, 1], [], []>} : vector<16x16xbf16>, vector<16x128xbf16>, vector<16x128xf32> -> vector<16x128xf32>
    %c0_4 = arith.constant 0 : index
    %c0_5 = arith.constant 0 : index
    %6 = vector.load %arg8[%c0_4, %c0_5] : memref<16x128xf32, #tpu.memory_space<vmem>>, vector<16x128xf32>
    %7 = arith.addf %6, %5 : vector<16x128xf32>
    %c0_6 = arith.constant 0 : index
    %c0_7 = arith.constant 0 : index
    %8 = vector.load %arg8[%c0_6, %c0_7] : memref<16x128xf32, #tpu.memory_space<vmem>>, vector<16x128xf32>
    tpu.vector_store %arg8[%c0_6, %c0_7], %7 {strides = array<i32>} : memref<16x128xf32, #tpu.memory_space<vmem>>, vector<16x128xf32>,
    %c0_i32_8 = arith.constant 0 : i32
    %9 = arith.cmpi eq, %arg1, %c0_i32_8 : i32
    %10 = arith.extui %9 : i1 to i32
    %c0_i32_9 = arith.constant 0 : i32
    %11 = arith.cmpi ne, %10, %c0_i32_9 : i32
    scf.if %11 {
      %c0_10 = arith.constant 0 : index
      %c0_11 = arith.constant 0 : index
      %12 = vector.load %arg8[%c0_10, %c0_11] : memref<16x128xf32, #tpu.memory_space<vmem>>, vector<16x128xf32>
      %c0_12 = arith.constant 0 : index
      %c0_13 = arith.constant 0 : index
      %13 = vector.load %arg4[%c0_12, %c0_13] : memref<16x1xf32, #tpu.memory_space<vmem>>, vector<16x1xf32>
      %14 = vector.broadcast %13 : vector<16x1xf32> to vector<16x128xf32>
      %15 = arith.mulf %12, %14 : vector<16x128xf32>
      %cst_14 = arith.constant 0.000000e+00 : f32
      %16 = vector.broadcast %cst_14 : f32 to vector<16x128xf32>
      %17 = arith.maximumf %15, %16 : vector<16x128xf32>
      %18 = arith.truncf %17 : vector<16x128xf32> to vector<16x128xbf16>
      %c0_15 = arith.constant 0 : index
      %c0_16 = arith.constant 0 : index
      %19 = vector.load %arg5[%c0_15, %c0_16] : memref<128x128xbf16, #tpu.memory_space<vmem>>, vector<128x128xbf16>
      %cst_17 = arith.constant dense<0.000000e+00> : vector<16x128xf32>
      %20 = tpu.matmul %18, %19, %cst_17 {dimension_numbers = #tpu.dot_dimension_numbers<[1], [0], [0], [1], [0, 0, 1, 1], [], []>} : vector<16x128xbf16>, vector<128x128xbf16>, vector<16x128xf32> -> vector<16x128xf32>
      %cst_18 = arith.constant 0.000000e+00 : f32
      %21 = vector.broadcast %cst_18 : f32 to vector<16x128xf32>
      %22 = arith.maximumf %20, %21 : vector<16x128xf32>
      %23 = arith.truncf %22 : vector<16x128xf32> to vector<16x128xbf16>
      %c0_19 = arith.constant 0 : index
      %c0_20 = arith.constant 0 : index
      %24 = vector.load %arg6[%c0_19, %c0_20] : memref<128x128xbf16, #tpu.memory_space<vmem>>, vector<128x128xbf16>
      %cst_21 = arith.constant dense<0.000000e+00> : vector<16x128xf32>
      %25 = tpu.matmul %23, %24, %cst_21 {dimension_numbers = #tpu.dot_dimension_numbers<[1], [0], [0], [1], [0, 0, 1, 1], [], []>} : vector<16x128xbf16>, vector<128x128xbf16>, vector<16x128xf32> -> vector<16x128xf32>
      %cst_22 = arith.constant 0.000000e+00 : f32
      %26 = vector.broadcast %cst_22 : f32 to vector<16x128xf32>
      %27 = arith.maximumf %25, %26 : vector<16x128xf32>
      %28 = arith.truncf %27 : vector<16x128xf32> to vector<16x128xbf16>
      %c0_23 = arith.constant 0 : index
      %c0_24 = arith.constant 0 : index
      %29 = vector.load %arg7[%c0_23, %c0_24] : memref<16x128xbf16, #tpu.memory_space<vmem>>, vector<16x128xbf16>
      tpu.vector_store %arg7[%c0_23, %c0_24], %28 {strides = array<i32>} : memref<16x128xbf16, #tpu.memory_space<vmem>>, vector<16x128xbf16>,
    } else {
    }
    return
  }
  func.func @transform_0(%arg0: i32, %arg1: i32) -> (i32, i32) {
    %c0_i32 = arith.constant 0 : i32
    return %arg1, %arg0 : i32, i32
  }
  func.func @transform_1(%arg0: i32, %arg1: i32) -> (i32, i32) {
    %c0_i32 = arith.constant 0 : i32
    %c0_i32_0 = arith.constant 0 : i32
    return %arg1, %c0_i32 : i32, i32
  }
  func.func @transform_2(%arg0: i32, %arg1: i32) -> (i32, i32) {
    %c0_i32 = arith.constant 0 : i32
    %c0_i32_0 = arith.constant 0 : i32
    return %arg0, %c0_i32 : i32, i32
  }
  func.func @transform_3(%arg0: i32, %arg1: i32) -> (i32, i32) {
    %c0_i32 = arith.constant 0 : i32
    %c0_i32_0 = arith.constant 0 : i32
    %c0_i32_1 = arith.constant 0 : i32
    return %c0_i32, %c0_i32_0 : i32, i32
  }
  func.func @transform_4(%arg0: i32, %arg1: i32) -> (i32, i32) {
    %c0_i32 = arith.constant 0 : i32
    %c0_i32_0 = arith.constant 0 : i32
    %c0_i32_1 = arith.constant 0 : i32
    return %c0_i32, %c0_i32_0 : i32, i32
  }
  func.func @transform_5(%arg0: i32, %arg1: i32) -> (i32, i32) {
    %c0_i32 = arith.constant 0 : i32
    %c0_i32_0 = arith.constant 0 : i32
    return %arg0, %c0_i32 : i32, i32
  }
}

module attributes {stable_mosaic.version = 11 : i64} {
  func.func @kernel(%arg0: i32, %arg1: i32, %arg2: memref<16x16xbf16, #tpu.memory_space<vmem>>, %arg3: memref<16x128xbf16, #tpu.memory_space<vmem>>, %arg4: memref<16x1xf32, #tpu.memory_space<vmem>>, %arg5: memref<128x128xbf16, #tpu.memory_space<vmem>>, %arg6: memref<128x128xbf16, #tpu.memory_space<vmem>>, %arg7: memref<16x128xf32, #tpu.memory_space<vmem>>, %arg8: memref<16x128xf32, #tpu.memory_space<vmem>>) attributes {dimension_semantics = [#tpu.dimension_semantics<parallel>, #tpu.dimension_semantics<arbitrary>], iteration_bounds = array<i64: 1, 1>, scalar_prefetch = 0 : i64, scratch_operands = 1 : i64, tpu.core_type = #tpu.core_type<tc>, window_params = [{transform_indices = @transform_0, window_bounds = array<i64: 16, 16>}, {transform_indices = @transform_1, window_bounds = array<i64: 16, 128>}, {transform_indices = @transform_2, window_bounds = array<i64: 16, 1>}, {pipeline_mode = #tpu.pipeline_mode<synchronous>, transform_indices = @transform_3, window_bounds = array<i64: 128, 128>}, {pipeline_mode = #tpu.pipeline_mode<synchronous>, transform_indices = @transform_4, window_bounds = array<i64: 128, 128>}, {transform_indices = @transform_5, window_bounds = array<i64: 16, 128>}]} {
    %c0_i32 = arith.constant 0 : i32
    %0 = arith.cmpi eq, %arg1, %c0_i32 : i32
    %1 = arith.extui %0 : i1 to i32
    %c0_i32_0 = arith.constant 0 : i32
    %2 = arith.cmpi ne, %1, %c0_i32_0 : i32
    scf.if %2 {
      %cst_10 = arith.constant 0.000000e+00 : f32
      %12 = vector.broadcast %cst_10 : f32 to vector<16x128xf32>
      %c0_11 = arith.constant 0 : index
      %c0_12 = arith.constant 0 : index
      %13 = vector.load %arg8[%c0_11, %c0_12] : memref<16x128xf32, #tpu.memory_space<vmem>>, vector<16x128xf32>
      tpu.vector_store %arg8[%c0_11, %c0_12], %12 {strides = array<i32>} : memref<16x128xf32, #tpu.memory_space<vmem>>, vector<16x128xf32>,
    } else {
    }
    %c0 = arith.constant 0 : index
    %c0_1 = arith.constant 0 : index
    %3 = vector.load %arg2[%c0, %c0_1] : memref<16x16xbf16, #tpu.memory_space<vmem>>, vector<16x16xbf16>
    %c0_2 = arith.constant 0 : index
    %c0_3 = arith.constant 0 : index
    %4 = vector.load %arg3[%c0_2, %c0_3] : memref<16x128xbf16, #tpu.memory_space<vmem>>, vector<16x128xbf16>
    %cst = arith.constant dense<0.000000e+00> : vector<16x128xf32>
    %5 = tpu.matmul %3, %4, %cst {dimension_numbers = #tpu.dot_dimension_numbers<[1], [0], [0], [1], [0, 0, 1, 1], [], []>} : vector<16x16xbf16>, vector<16x128xbf16>, vector<16x128xf32> -> vector<16x128xf32>
    %c0_4 = arith.constant 0 : index
    %c0_5 = arith.constant 0 : index
    %6 = vector.load %arg8[%c0_4, %c0_5] : memref<16x128xf32, #tpu.memory_space<vmem>>, vector<16x128xf32>
    %7 = arith.addf %6, %5 : vector<16x128xf32>
    %c0_6 = arith.constant 0 : index
    %c0_7 = arith.constant 0 : index
    %8 = vector.load %arg8[%c0_6, %c0_7] : memref<16x128xf32, #tpu.memory_space<vmem>>, vector<16x128xf32>
    tpu.vector_store %arg8[%c0_6, %c0_7], %7 {strides = array<i32>} : memref<16x128xf32, #tpu.memory_space<vmem>>, vector<16x128xf32>,
    %c0_i32_8 = arith.constant 0 : i32
    %9 = arith.cmpi eq, %arg1, %c0_i32_8 : i32
    %10 = arith.extui %9 : i1 to i32
    %c0_i32_9 = arith.constant 0 : i32
    %11 = arith.cmpi ne, %10, %c0_i32_9 : i32
    scf.if %11 {
      %c0_10 = arith.constant 0 : index
      %c0_11 = arith.constant 0 : index
      %12 = vector.load %arg8[%c0_10, %c0_11] : memref<16x128xf32, #tpu.memory_space<vmem>>, vector<16x128xf32>
      %c0_12 = arith.constant 0 : index
      %c0_13 = arith.constant 0 : index
      %13 = vector.load %arg4[%c0_12, %c0_13] : memref<16x1xf32, #tpu.memory_space<vmem>>, vector<16x1xf32>
      %14 = vector.broadcast %13 : vector<16x1xf32> to vector<16x128xf32>
      %15 = arith.mulf %12, %14 : vector<16x128xf32>
      %cst_14 = arith.constant 0.000000e+00 : f32
      %16 = vector.broadcast %cst_14 : f32 to vector<16x128xf32>
      %17 = arith.maximumf %15, %16 : vector<16x128xf32>
      %18 = arith.truncf %17 : vector<16x128xf32> to vector<16x128xbf16>
      %c0_15 = arith.constant 0 : index
      %c0_16 = arith.constant 0 : index
      %19 = vector.load %arg5[%c0_15, %c0_16] : memref<128x128xbf16, #tpu.memory_space<vmem>>, vector<128x128xbf16>
      %cst_17 = arith.constant dense<0.000000e+00> : vector<16x128xf32>
      %20 = tpu.matmul %18, %19, %cst_17 {dimension_numbers = #tpu.dot_dimension_numbers<[1], [0], [0], [1], [0, 0, 1, 1], [], []>} : vector<16x128xbf16>, vector<128x128xbf16>, vector<16x128xf32> -> vector<16x128xf32>
      %cst_18 = arith.constant 0.000000e+00 : f32
      %21 = vector.broadcast %cst_18 : f32 to vector<16x128xf32>
      %22 = arith.maximumf %20, %21 : vector<16x128xf32>
      %23 = arith.truncf %22 : vector<16x128xf32> to vector<16x128xbf16>
      %c0_19 = arith.constant 0 : index
      %c0_20 = arith.constant 0 : index
      %24 = vector.load %arg6[%c0_19, %c0_20] : memref<128x128xbf16, #tpu.memory_space<vmem>>, vector<128x128xbf16>
      %cst_21 = arith.constant dense<0.000000e+00> : vector<16x128xf32>
      %25 = tpu.matmul %23, %24, %cst_21 {dimension_numbers = #tpu.dot_dimension_numbers<[1], [0], [0], [1], [0, 0, 1, 1], [], []>} : vector<16x128xbf16>, vector<128x128xbf16>, vector<16x128xf32> -> vector<16x128xf32>
      %cst_22 = arith.constant 0.000000e+00 : f32
      %26 = vector.broadcast %cst_22 : f32 to vector<16x128xf32>
      %27 = arith.maximumf %25, %26 : vector<16x128xf32>
      %c0_23 = arith.constant 0 : index
      %c0_24 = arith.constant 0 : index
      %28 = vector.load %arg7[%c0_23, %c0_24] : memref<16x128xf32, #tpu.memory_space<vmem>>, vector<16x128xf32>
      tpu.vector_store %arg7[%c0_23, %c0_24], %27 {strides = array<i32>} : memref<16x128xf32, #tpu.memory_space<vmem>>, vector<16x128xf32>,
    } else {
    }
    return
  }
  func.func @transform_0(%arg0: i32, %arg1: i32) -> (i32, i32) {
    %c0_i32 = arith.constant 0 : i32
    return %arg0, %arg1 : i32, i32
  }
  func.func @transform_1(%arg0: i32, %arg1: i32) -> (i32, i32) {
    %c0_i32 = arith.constant 0 : i32
    %c0_i32_0 = arith.constant 0 : i32
    return %arg1, %c0_i32 : i32, i32
  }
  func.func @transform_2(%arg0: i32, %arg1: i32) -> (i32, i32) {
    %c0_i32 = arith.constant 0 : i32
    %c0_i32_0 = arith.constant 0 : i32
    return %arg0, %c0_i32 : i32, i32
  }
  func.func @transform_3(%arg0: i32, %arg1: i32) -> (i32, i32) {
    %c0_i32 = arith.constant 0 : i32
    %c0_i32_0 = arith.constant 0 : i32
    %c0_i32_1 = arith.constant 0 : i32
    return %c0_i32, %c0_i32_0 : i32, i32
  }
  func.func @transform_4(%arg0: i32, %arg1: i32) -> (i32, i32) {
    %c0_i32 = arith.constant 0 : i32
    %c0_i32_0 = arith.constant 0 : i32
    %c0_i32_1 = arith.constant 0 : i32
    return %c0_i32, %c0_i32_0 : i32, i32
  }
  func.func @transform_5(%arg0: i32, %arg1: i32) -> (i32, i32) {
    %c0_i32 = arith.constant 0 : i32
    %c0_i32_0 = arith.constant 0 : i32
    return %arg0, %c0_i32 : i32, i32
  }
}

</mosaic_0001>

<bundles_post_ra>
// kernel: allset_layer.4
= control target key start
LH: loop header
LB: loop body
LE: loop exit
PB: predicated region body
PF: predicated region fallthrough
CT: control target
= control target key end

     0   :  { %v509_v0 = vmov 0.0   ;;  %vm510_vm0 = vmmov 0   ;;  %s644_s1 = inlined_call_operand.vmem [shape: bf16[128,128], index: 1, kind: input, shape index: {}]   ;;  %s645_s2 = inlined_call_operand.vmem [shape: bf16[128,128], index: 2, kind: input, shape index: {}]   ;;  %s646_s0 = inlined_call_operand.vmem [shape: bf16[16,128], index: 0, kind: input, shape index: {}]   ;;  %s647_s3 = inlined_call_operand.vmem [shape: bf16[128,128], index: 3, kind: input, shape index: {}]   ;;  %s648_s4 = inlined_call_operand.vmem [shape: bf16[16,128], index: 4, kind: output, shape index: {}]  }
   0x1   :  { %422 = vmatprep.subr.bf16.mxu0 %v509_v0  ;;  %v484_v1 = vld [vmem:[%s644_s1] sm:$0xff]   ;;  %438 = vmatprep.mubr.msk.bf16.mxu0 %vm510_vm0, %v509_v0  ;;  %v485_v2 = vld [vmem:[%s644_s1 + $0x8] sm:$0xff]   ;;  %v486_v3 = vld [vmem:[%s644_s1 + $0x10] sm:$0xff]  }
   0x2   :  { %442 = vmatprep.subr.bf16.mxu1 %v509_v0  ;;  %458 = vmatprep.mubr.msk.bf16.mxu1 %vm510_vm0, %v509_v0  ;;  %v493_v4 = vld [vmem:[%s645_s2] sm:$0xff]   ;;  %v487_v5 = vld [vmem:[%s644_s1 + $0x18] sm:$0xff]   ;;  %v494_v6 = vld [vmem:[%s645_s2 + $0x8] sm:$0xff]  }
   0x3   :  { %423 = vmatpush3.bf16.msra.mxu0 %v484_v1  ;;  %443 = vmatpush3.bf16.msra.mxu1 %v493_v4  ;;  %v488_v7 = vld [vmem:[%s644_s1 + $0x20] sm:$0xff]   ;;  %v495_v8 = vld [vmem:[%s645_s2 + $0x10] sm:$0xff]   ;;  %v489_v9 = vld [vmem:[%s644_s1 + $0x28] sm:$0xff]  }
   0x4   :  { %424 = vmatprep.subr.bf16.mxu0 %v509_v0  ;;  %444 = vmatprep.subr.bf16.mxu1 %v509_v0  ;;  %v496_v10 = vld [vmem:[%s645_s2 + $0x18] sm:$0xff]   ;;  %v490_v11 = vld [vmem:[%s644_s1 + $0x30] sm:$0xff]   ;;  %v497_v12 = vld [vmem:[%s645_s2 + $0x20] sm:$0xff]  }
   0x5   :  { %v491_v13 = vld [vmem:[%s644_s1 + $0x38] sm:$0xff]   ;;  %v498_v14 = vld [vmem:[%s645_s2 + $0x28] sm:$0xff]   ;;  %v492_v15 = vld [vmem:[%s646_s0] sm:$0xff]  }
   0x6   :  { %v499_v16 = vld [vmem:[%s645_s2 + $0x30] sm:$0xff]   ;;  %v500_v17 = vld [vmem:[%s645_s2 + $0x38] sm:$0xff]   ;;  %v501_v18 = vld [vmem:[%s647_s3] sm:$0xff]  }
   0x7   :  { %425 = vmatpush3.bf16.msra.mxu0 %v485_v2  ;;  %445 = vmatpush3.bf16.msra.mxu1 %v494_v6  ;;  %v502_v19 = vld [vmem:[%s647_s3 + $0x8] sm:$0xff]   ;;  %v503_v20 = vld [vmem:[%s647_s3 + $0x10] sm:$0xff]   ;;  %v504_v21 = vld [vmem:[%s647_s3 + $0x18] sm:$0xff]  }
   0x8   :  { %426 = vmatprep.subr.bf16.mxu0 %v509_v0  ;;  %446 = vmatprep.subr.bf16.mxu1 %v509_v0  ;;  %v505_v22 = vld [vmem:[%s647_s3 + $0x20] sm:$0xff]   ;;  %v506_v23 = vld [vmem:[%s647_s3 + $0x28] sm:$0xff]   ;;  %v507_v31 = vld [vmem:[%s647_s3 + $0x30] sm:$0xff]  }
   0x9   :  { %v508_v32 = vld [vmem:[%s647_s3 + $0x38] sm:$0xff]  }
   0xb   :  { %427 = vmatpush3.bf16.msra.mxu0 %v486_v3  ;;  %447 = vmatpush3.bf16.msra.mxu1 %v495_v8 }
   0xc   :  { %428 = vmatprep.subr.bf16.mxu0 %v509_v0  ;;  %448 = vmatprep.subr.bf16.mxu1 %v509_v0 }
   0xf   :  { %429 = vmatpush3.bf16.msra.mxu0 %v487_v5  ;;  %449 = vmatpush3.bf16.msra.mxu1 %v496_v10 }
  0x10   :  { %430 = vmatprep.subr.bf16.mxu0 %v509_v0  ;;  %450 = vmatprep.subr.bf16.mxu1 %v509_v0 }
  0x13   :  { %431 = vmatpush3.bf16.msra.mxu0 %v488_v7  ;;  %451 = vmatpush3.bf16.msra.mxu1 %v497_v12 }
  0x14   :  { %432 = vmatprep.subr.bf16.mxu0 %v509_v0  ;;  %452 = vmatprep.subr.bf16.mxu1 %v509_v0 }
  0x17   :  { %433 = vmatpush3.bf16.msra.mxu0 %v489_v9  ;;  %453 = vmatpush3.bf16.msra.mxu1 %v498_v14 }
  0x18   :  { %434 = vmatprep.subr.bf16.mxu0 %v509_v0  ;;  %454 = vmatprep.subr.bf16.mxu1 %v509_v0 }
  0x1b   :  { %435 = vmatpush3.bf16.msra.mxu0 %v490_v11  ;;  %455 = vmatpush3.bf16.msra.mxu1 %v499_v16 }
  0x1c   :  { %436 = vmatprep.subr.bf16.mxu0 %v509_v0  ;;  %456 = vmatprep.subr.bf16.mxu1 %v509_v0 }
  0x1f   :  { %437 = vmatpush3.bf16.msra.mxu0 %v491_v13  ;;  %457 = vmatpush3.bf16.msra.mxu1 %v500_v17 }
  0x20   :  { %462 = vmatprep.subr.bf16.mxu0 %v509_v0 }
  0x22   :  { %439 = vmatmul.mubr.bf16.vlgmr.msra.gmra.mrb[0].mxu0 %v492_v15 }
  0x23   :  { %478 = vmatprep.mubr.msk.bf16.mxu0 %vm510_vm0, %v509_v0  ;;  %463 = vmatpush3.bf16.msra.mxu0 %v501_v18 }
  0x24   :  { %464 = vmatprep.subr.bf16.mxu0 %v509_v0 }
  0x27   :  { %465 = vmatpush3.bf16.msra.mxu0 %v502_v19 }
  0x28   :  { %466 = vmatprep.subr.bf16.mxu0 %v509_v0 }
  0x2b   :  { %467 = vmatpush3.bf16.msra.mxu0 %v503_v20 }
  0x2c   :  { %468 = vmatprep.subr.bf16.mxu0 %v509_v0 }
  0x2f   :  { %469 = vmatpush3.bf16.msra.mxu0 %v504_v21 }
  0x30   :  { %470 = vmatprep.subr.bf16.mxu0 %v509_v0 }
  0x33   :  { %471 = vmatpush3.bf16.msra.mxu0 %v505_v22 }
  0x34   :  { %472 = vmatprep.subr.bf16.mxu0 %v509_v0 }
  0x37   :  { %473 = vmatpush3.bf16.msra.mxu0 %v506_v23 }
  0x38   :  { %474 = vmatprep.subr.bf16.mxu0 %v509_v0 }
  0x3b   :  { %475 = vmatpush3.bf16.msra.mxu0 %v507_v31 }
  0x3c   :  { %476 = vmatprep.subr.bf16.mxu0 %v509_v0 }
  0x3f   :  { %477 = vmatpush3.bf16.msra.mxu0 %v508_v32 }
  0xf5   :  { %v124_v24 = vpop.f32.mrb[0].mxu0 }
  0xf6   :  { %v440_v25 = vpop.f32.mrb[1].mxu0  ;;  %v131_v27 = vmax.f32 %v124_v24, 0.0 }
  0xf7   :  { %v127_v26 = vpop.f32.mrb[2].mxu0 }
  0xf8   :  { %v132_v28 = vmax.f32 %v127_v26, 0.0  ;;  %v441_v29 = vpop.f32.mrb[3].mxu0 }
  0xfa   :  { %v133_v30 = vpack.c.bf16 %v132_v28, %v131_v27 }
  0xfc   :  { %459 = vmatmul.mubr.bf16.vlgmr.msra.gmra.mrb[0].mxu1 %v133_v30 }
 0x1cf   :  { %v232_v33 = vpop.f32.mrb[0].mxu1 }
 0x1d0   :  { %v460_v34 = vpop.f32.mrb[1].mxu1  ;;  %v239_v36 = vmax.f32 %v232_v33, 0.0 }
 0x1d1   :  { %v235_v35 = vpop.f32.mrb[2].mxu1 }
 0x1d2   :  { %v240_v37 = vmax.f32 %v235_v35, 0.0  ;;  %v461_v38 = vpop.f32.mrb[3].mxu1 }
 0x1d4   :  { %v241_v39 = vpack.c.bf16 %v240_v37, %v239_v36 }
 0x1d6   :  { %479 = vmatmul.mubr.bf16.vlgmr.msra.gmra.mrb[4].mxu0 %v241_v39 }
 0x2a9   :  { %v340_v40 = vpop.f32.mrb[4].mxu0 }
 0x2aa   :  { %v480_v41 = vpop.f32.mrb[5].mxu0 }
 0x2ab   :  { %v343_v42 = vpop.f32.mrb[6].mxu0 }
 0x2ac   :  { %v393_v43 = vpack.c.bf16 %v343_v42, %v340_v40  ;;  %v481_v44 = vpop.f32.mrb[7].mxu0 }
 0x2ae   :  { %394 = vst [vmem:[%s648_s4] sm:$0xff] %v393_v43  }

// kernel: allset_layer.7
= control target key start
LH: loop header
LB: loop body
LE: loop exit
PB: predicated region body
PF: predicated region fallthrough
CT: control target
= control target key end

     0   :  { %v483_v1 = vmov 0.0   ;;  %vm484_vm0 = vmmov 0   ;;  %vm43_vm1 = vcmask 130048   ;;  %v485_v4 = vmov 0   ;;  %s611_s0 = inlined_call_operand.vmem [shape: bf16[16,16], index: 0, kind: input, shape index: {}]   ;;  %s612_s1 = inlined_call_operand.vmem [shape: bf16[16,128], index: 1, kind: input, shape index: {}]   ;;  %s613_s2 = inlined_call_operand.vmem [shape: f32[16,1], index: 2, kind: input, shape index: {}]   ;;  %s614_s3 = inlined_call_operand.vmem [shape: bf16[128,128], index: 3, kind: input, shape index: {}]   ;;  %s615_s4 = inlined_call_operand.vmem [shape: bf16[128,128], index: 4, kind: input, shape index: {}]   ;;  %s616_s5 = inlined_call_operand.hbm [shape: f32[16,128], index: 5, kind: output, shape index: {}]  }
   0x1   :  { %v441_v0 = vld [vmem:[%s612_s1] sm:$0xff]   ;;  %388 = vmatprep.subr.bf16.mxu0 %v483_v1  ;;  %394 = vmatprep.subr.bf16.mxu1 %v483_v1  ;;  %v100_v6 = vld [vmem:[%s613_s2 + $0x8] sm:$0xff]  ;;  %v445_v8 = vld [vmem:[%s614_s3 + $0x10] sm:$0xff]  }
   0x2   :  { %v442_v2 = vld [vmem:[%s611_s0] sm:$0xff]   ;;  %389 = vmatpush3.bf16.msra.mxu0 %v441_v0  ;;  %390 = vmatprep.mubr.msk.bf16.mxu0 %vm484_vm0, %v483_v1  ;;  %v444_v7 = vld [vmem:[%s614_s3 + $0x8] sm:$0xff]   ;;  %v446_v9 = vld [vmem:[%s614_s3 + $0x18] sm:$0xff]  }
   0x3   :  { %v99_v3 = vld [vmem:[%s613_s2] sm:$0xff]  ;;  %440 = vset.pattern.permute.xlu0 %v485_v4  ;;  %410 = vmatprep.mubr.msk.bf16.mxu1 %vm484_vm0, %v483_v1 }
   0x4   :  { %v443_v5 = vld [vmem:[%s614_s3] sm:$0xff]   ;;  %103 = vperm.xlu0 %440, %v99_v3   ;;  %414 = vmatprep.subr.bf16.mxu0 %v483_v1 }
   0x5   :  { %391 = vmatmul.mubr.msk.bf16.vlgmr.msra.gmra.mrb[0].mxu0 %vm43_vm1, %v442_v2  ;;  %395 = vmatpush3.bf16.msra.mxu1 %v443_v5 }
   0x6   :  { %396 = vmatprep.subr.bf16.mxu1 %v483_v1  ;;  %430 = vmatprep.mubr.msk.bf16.mxu0 %vm484_vm0, %v483_v1 }
   0x8   :  { %108 = vperm.xlu0 %440, %v100_v6  }
   0x9   :  { %397 = vmatpush3.bf16.msra.mxu1 %v444_v7 }
   0xa   :  { %398 = vmatprep.subr.bf16.mxu1 %v483_v1 }
   0xd   :  { %399 = vmatpush3.bf16.msra.mxu1 %v445_v8 }
   0xe   :  { %400 = vmatprep.subr.bf16.mxu1 %v483_v1 }
   0xf   :  { %10 = vsyncpa [#allocation4], 0  ;;  %v447_v10 = vld [vmem:[%s614_s3 + $0x20] sm:$0xff]   ;;  %v448_v11 = vld [vmem:[%s614_s3 + $0x28] sm:$0xff]   ;;  %s486_s27 = smov [#allocation3]  }
  0x10   :  { %v449_v12 = vld [vmem:[%s614_s3 + $0x30] sm:$0xff]   ;;  %v450_v13 = vld [vmem:[%s614_s3 + $0x38] sm:$0xff]   ;;  %v451_v14 = vld [vmem:[%s615_s4] sm:$0xff]   ;;  %s338_s28 = sshll.u32 %s486_s27, 4  ;;  %s339_s28 = int_to_ptr.vmem [resolvable:$true] %s338_s28 }
  0x11   :  { %401 = vmatpush3.bf16.msra.mxu1 %v446_v9  ;;  %415 = vmatpush3.bf16.msra.mxu0 %v451_v14  ;;  %v452_v15 = vld [vmem:[%s615_s4 + $0x8] sm:$0xff]   ;;  %v453_v16 = vld [vmem:[%s615_s4 + $0x10] sm:$0xff]   ;;  %v454_v17 = vld [vmem:[%s615_s4 + $0x18] sm:$0xff]   ;;  %p464_p1 = scmp.lt.s32.totalorder %s339_s28, %s339_s28 }
  0x12   :  { %402 = vmatprep.subr.bf16.mxu1 %v483_v1  ;;  %416 = vmatprep.subr.bf16.mxu0 %v483_v1  ;;  %v455_v18 = vld [vmem:[%s615_s4 + $0x20] sm:$0xff]   ;;  %v456_v19 = vld [vmem:[%s615_s4 + $0x28] sm:$0xff]   ;;  %v457_v31 = vld [vmem:[%s615_s4 + $0x30] sm:$0xff]  }
  0x13   :  { %v458_v32 = vld [vmem:[%s615_s4 + $0x38] sm:$0xff]   ;;  %s459_s4 = scalar_lea.vmem %s339_s28, 256 }
  0x14   :  { %p460_p0 = scmp.ne.s32.totalorder %s339_s28, %s459_s4  ;;  %p465_p2 = scmp.lt.s32.totalorder %s459_s4, %s459_s4 }
  0x15   :  { %403 = vmatpush3.bf16.msra.mxu1 %v447_v10  ;;  %417 = vmatpush3.bf16.msra.mxu0 %v452_v15 }
  0x16   :  { %404 = vmatprep.subr.bf16.mxu1 %v483_v1  ;;  %418 = vmatprep.subr.bf16.mxu0 %v483_v1  ;;  %p466_p3 = por %p465_p2, %p464_p1 }
  0x18   :  { %p467_p4 = pnand %p466_p3, %p460_p0 }
  0x19   :  { %405 = vmatpush3.bf16.msra.mxu1 %v448_v11  ;;  %419 = vmatpush3.bf16.msra.mxu0 %v453_v16 }
  0x1a   :  { %406 = vmatprep.subr.bf16.mxu1 %v483_v1  ;;  %420 = vmatprep.subr.bf16.mxu0 %v483_v1 }
  0x1d   :  { %407 = vmatpush3.bf16.msra.mxu1 %v449_v12  ;;  %421 = vmatpush3.bf16.msra.mxu0 %v454_v17 }
  0x1e   :  { %408 = vmatprep.subr.bf16.mxu1 %v483_v1  ;;  %422 = vmatprep.subr.bf16.mxu0 %v483_v1 }
  0x21   :  { %409 = vmatpush3.bf16.msra.mxu1 %v450_v13  ;;  %423 = vmatpush3.bf16.msra.mxu0 %v455_v18 }
  0x22   :  { %424 = vmatprep.subr.bf16.mxu0 %v483_v1 }
  0x25   :  { %425 = vmatpush3.bf16.msra.mxu0 %v456_v19 }
  0x26   :  { %426 = vmatprep.subr.bf16.mxu0 %v483_v1 }
  0x29   :  { %427 = vmatpush3.bf16.msra.mxu0 %v457_v31 }
  0x2a   :  { %428 = vmatprep.subr.bf16.mxu0 %v483_v1 }
  0x2d   :  { %429 = vmatpush3.bf16.msra.mxu0 %v458_v32 }
  0x83   :  { %v104_v20 = vpop.permute.xlu0 %103 }
  0x87   :  { %v109_v24 = vpop.permute.xlu0 %108 }
  0xd8   :  { %v81_v21 = vpop.f32.mrb[0].mxu0 }
  0xd9   :  { %v111_v22 = vmul.f32 %v104_v20, %v81_v21  ;;  %v392_v23 = vpop.f32.mrb[1].mxu0 }
  0xda   :  { %v84_v25 = vpop.f32.mrb[2].mxu0 }
  0xdb   :  { %v112_v26 = vmul.f32 %v109_v24, %v84_v25  ;;  %v393_v27 = vpop.f32.mrb[3].mxu0  ;;  %v113_v28 = vmax.f32 %v111_v22, 0.0 }
  0xdd   :  { %v114_v29 = vmax.f32 %v112_v26, 0.0 }
  0xdf   :  { %v115_v30 = vpack.c.bf16 %v114_v29, %v113_v28 }
  0xe1   :  { %411 = vmatmul.mubr.bf16.vlgmr.msra.gmra.mrb[0].mxu1 %v115_v30 }
 0x1b4   :  { %v214_v33 = vpop.f32.mrb[0].mxu1 }
 0x1b5   :  { %v412_v34 = vpop.f32.mrb[1].mxu1  ;;  %v221_v36 = vmax.f32 %v214_v33, 0.0 }
 0x1b6   :  { %v217_v35 = vpop.f32.mrb[2].mxu1 }
 0x1b7   :  { %v222_v37 = vmax.f32 %v217_v35, 0.0  ;;  %v413_v38 = vpop.f32.mrb[3].mxu1 }
 0x1b9   :  { %v223_v39 = vpack.c.bf16 %v222_v37, %v221_v36 }
 0x1bb   :  { %431 = vmatmul.mubr.bf16.vlgmr.msra.gmra.mrb[4].mxu0 %v223_v39 }
 0x28e   :  { %v322_v40 = vpop.f32.mrb[4].mxu0 }
 0x28f   :  { %v329_v41 = vmax.f32 %v322_v40, 0.0  ;;  %v432_v42 = vpop.f32.mrb[5].mxu0 }
 0x290   :  { %v325_v43 = vpop.f32.mrb[6].mxu0 }
 0x291   :  { %331 = vst [vmem:[#allocation3] sm:$0xff] %v329_v41  ;;  %v330_v44 = vmax.f32 %v325_v43, 0.0  ;;  %v433_v45 = vpop.f32.mrb[7].mxu0 }
 0x293   :  { %332 = vst [vmem:[#allocation3 + $0x8] sm:$0xff] %v330_v44 }
 0x294   :  { %470 = shalt.err (!%p467_p4)
}
 0x295   :  { %s471_s30 = scalar_lea.hbm %s616_s5, 256 }
 0x296   :  { %p472_p5 = scmp.ne.s32.totalorder %s616_s5, %s471_s30  ;;  %p475_p6 = scmp.lt.u32.totalorder %s471_s30, %s616_s5 }
 0x298   :  { %p477_p7 = pnand %p475_p6, %p472_p5 }
 0x29a   :  { %480 = shalt.err (!%p477_p7)
}
 0x29b   :  { %s487_s10 = smov 128   ;;  %s488_s11 = smov 8  }
 0x29c   :  { %344 = dma.vmem_to_hbm [thread:$0]  %s339_s28, 256, %s616_s5, [#allocation4], %s487_s10, %s487_s10, %s488_s11  }
 0x29d   :  { %481 = dma.done.wait [#allocation4], 256  }
 0x29e   :  { %482 = vsyncadd [#allocation4], 4294967040 }
 0x29f   :  { %348 = vsyncpa [#allocation4], 1 }

// kernel: allset_layer.5
= control target key start
LH: loop header
LB: loop body
LE: loop exit
PB: predicated region body
PF: predicated region fallthrough
CT: control target
= control target key end

     0   :  { %v478_v1 = vmov 0.0   ;;  %vm479_vm0 = vmmov 0   ;;  %v480_v3 = vmov 0   ;;  %vm59_vm1 = vcmask 130048   ;;  %s597_s0 = inlined_call_operand.vmem [shape: bf16[16,16], index: 0, kind: input, shape index: {}]   ;;  %s598_s1 = inlined_call_operand.vmem [shape: bf16[16,128], index: 1, kind: input, shape index: {}]   ;;  %s599_s3 = inlined_call_operand.vmem [shape: bf16[128,128], index: 3, kind: input, shape index: {}]   ;;  %s600_s2 = inlined_call_operand.vmem [shape: f32[16,1], index: 2, kind: input, shape index: {}]   ;;  %s601_s4 = inlined_call_operand.vmem [shape: bf16[128,128], index: 4, kind: input, shape index: {}]   ;;  %s602_s5 = inlined_call_operand.vmem [shape: bf16[16,128], index: 5, kind: output, shape index: {}]  }
   0x1   :  { %v460_v0 = vld [vmem:[%s597_s0] sm:$0xff]   ;;  %409 = vmatprep.subr.bf16.mxu0 %v478_v1  ;;  %411 = vmatprep.mubr.msk.bf16.mxu0 %vm479_vm0, %v478_v1  ;;  %v116_v4 = vld [vmem:[%s600_s2 + $0x8] sm:$0xff]  ;;  %v464_v8 = vld [vmem:[%s599_s3 + $0x10] sm:$0xff]  }
   0x2   :  { %v461_v2 = vld [vmem:[%s598_s1] sm:$0xff]   ;;  %459 = vset.pattern.permute.xlu1 %v480_v3  ;;  %415 = vmatprep.subr.bf16.mxu1 %v478_v1  ;;  %v463_v6 = vld [vmem:[%s599_s3 + $0x8] sm:$0xff]   ;;  %v465_v9 = vld [vmem:[%s599_s3 + $0x18] sm:$0xff]  }
   0x3   :  { %37 = vxpose.xlu0.c.b16.start.end [1/1] (short) (narrow) %v460_v0, 16  ;;  %431 = vmatprep.mubr.msk.bf16.mxu1 %vm479_vm0, %v478_v1  ;;  %v462_v5 = vld [vmem:[%s599_s3] sm:$0xff]   ;;  %v467_v11 = vld [vmem:[%s599_s3 + $0x28] sm:$0xff]   ;;  %v468_v13 = vld [vmem:[%s599_s3 + $0x30] sm:$0xff]  }
   0x4   :  { %410 = vmatpush3.bf16.msra.mxu0 %v461_v2  ;;  %124 = vperm.xlu1 %459, %v116_v4   ;;  %v115_v7 = vld [vmem:[%s600_s2] sm:$0xff]  ;;  %v469_v14 = vld [vmem:[%s599_s3 + $0x38] sm:$0xff]   ;;  %v471_v16 = vld [vmem:[%s601_s4 + $0x8] sm:$0xff]  }
   0x5   :  { %435 = vmatprep.subr.bf16.mxu0 %v478_v1  ;;  %416 = vmatpush3.bf16.msra.mxu1 %v462_v5  ;;  %v466_v10 = vld [vmem:[%s599_s3 + $0x20] sm:$0xff]   ;;  %v472_v17 = vld [vmem:[%s601_s4 + $0x10] sm:$0xff]   ;;  %v473_v18 = vld [vmem:[%s601_s4 + $0x18] sm:$0xff]  }
   0x6   :  { %417 = vmatprep.subr.bf16.mxu1 %v478_v1  ;;  %v470_v15 = vld [vmem:[%s601_s4] sm:$0xff]   ;;  %v475_v20 = vld [vmem:[%s601_s4 + $0x28] sm:$0xff]   ;;  %v476_v32 = vld [vmem:[%s601_s4 + $0x30] sm:$0xff]  }
   0x7   :  { %v474_v19 = vld [vmem:[%s601_s4 + $0x20] sm:$0xff]   ;;  %v477_v33 = vld [vmem:[%s601_s4 + $0x38] sm:$0xff]  }
   0x9   :  { %418 = vmatpush3.bf16.msra.mxu1 %v463_v6 }
   0xa   :  { %419 = vmatprep.subr.bf16.mxu1 %v478_v1 }
   0xc   :  { %458 = vset.pattern.permute.xlu0 %v480_v3 }
   0xd   :  { %119 = vperm.xlu0 %458, %v115_v7   ;;  %420 = vmatpush3.bf16.msra.mxu1 %v464_v8 }
   0xe   :  { %421 = vmatprep.subr.bf16.mxu1 %v478_v1 }
  0x11   :  { %422 = vmatpush3.bf16.msra.mxu1 %v465_v9 }
  0x12   :  { %423 = vmatprep.subr.bf16.mxu1 %v478_v1 }
  0x15   :  { %424 = vmatpush3.bf16.msra.mxu1 %v466_v10 }
  0x16   :  { %425 = vmatprep.subr.bf16.mxu1 %v478_v1 }
  0x19   :  { %426 = vmatpush3.bf16.msra.mxu1 %v467_v11 }
  0x1a   :  { %427 = vmatprep.subr.bf16.mxu1 %v478_v1 }
  0x1d   :  { %428 = vmatpush3.bf16.msra.mxu1 %v468_v13 }
  0x1e   :  { %429 = vmatprep.subr.bf16.mxu1 %v478_v1 }
  0x21   :  { %430 = vmatpush3.bf16.msra.mxu1 %v469_v14 }
  0x69   :  { %v45_v12 = vpop.trf.xlu0 }
  0x6a   :  { %412 = vmatmul.mubr.msk.bf16.vlgmr.msra.gmra.mrb[0].mxu0 %vm59_vm1, %v45_v12 }
  0x6b   :  { %451 = vmatprep.mubr.msk.bf16.mxu0 %vm479_vm0, %v478_v1  ;;  %436 = vmatpush3.bf16.msra.mxu0 %v470_v15 }
  0x6c   :  { %437 = vmatprep.subr.bf16.mxu0 %v478_v1 }
  0x6f   :  { %438 = vmatpush3.bf16.msra.mxu0 %v471_v16 }
  0x70   :  { %439 = vmatprep.subr.bf16.mxu0 %v478_v1 }
  0x73   :  { %440 = vmatpush3.bf16.msra.mxu0 %v472_v17 }
  0x74   :  { %441 = vmatprep.subr.bf16.mxu0 %v478_v1 }
  0x77   :  { %442 = vmatpush3.bf16.msra.mxu0 %v473_v18 }
  0x78   :  { %443 = vmatprep.subr.bf16.mxu0 %v478_v1 }
  0x7b   :  { %444 = vmatpush3.bf16.msra.mxu0 %v474_v19 }
  0x7c   :  { %445 = vmatprep.subr.bf16.mxu0 %v478_v1 }
  0x7f   :  { %446 = vmatpush3.bf16.msra.mxu0 %v475_v20 }
  0x80   :  { %447 = vmatprep.subr.bf16.mxu0 %v478_v1 }
  0x83   :  { %v125_v23 = vpop.permute.xlu1 %124  ;;  %448 = vmatpush3.bf16.msra.mxu0 %v476_v32 }
  0x84   :  { %449 = vmatprep.subr.bf16.mxu0 %v478_v1 }
  0x87   :  { %450 = vmatpush3.bf16.msra.mxu0 %v477_v33 }
  0x8c   :  { %v120_v21 = vpop.permute.xlu0 %119 }
 0x13d   :  { %v97_v22 = vpop.f32.mrb[0].mxu0 }
 0x13e   :  { %v127_v24 = vmul.f32 %v120_v21, %v97_v22  ;;  %v413_v25 = vpop.f32.mrb[1].mxu0 }
 0x13f   :  { %v100_v26 = vpop.f32.mrb[2].mxu0 }
 0x140   :  { %v128_v27 = vmul.f32 %v125_v23, %v100_v26  ;;  %v414_v28 = vpop.f32.mrb[3].mxu0  ;;  %v129_v29 = vmax.f32 %v127_v24, 0.0 }
 0x142   :  { %v130_v30 = vmax.f32 %v128_v27, 0.0 }
 0x144   :  { %v131_v31 = vpack.c.bf16 %v130_v30, %v129_v29 }
 0x146   :  { %432 = vmatmul.mubr.bf16.vlgmr.msra.gmra.mrb[0].mxu1 %v131_v31 }
 0x219   :  { %v230_v34 = vpop.f32.mrb[0].mxu1 }
 0x21a   :  { %v433_v35 = vpop.f32.mrb[1].mxu1  ;;  %v237_v37 = vmax.f32 %v230_v34, 0.0 }
 0x21b   :  { %v233_v36 = vpop.f32.mrb[2].mxu1 }
 0x21c   :  { %v238_v38 = vmax.f32 %v233_v36, 0.0  ;;  %v434_v39 = vpop.f32.mrb[3].mxu1 }
 0x21e   :  { %v239_v40 = vpack.c.bf16 %v238_v38, %v237_v37 }
 0x220   :  { %452 = vmatmul.mubr.bf16.vlgmr.msra.gmra.mrb[4].mxu0 %v239_v40 }
 0x2f3   :  { %v338_v41 = vpop.f32.mrb[4].mxu0 }
 0x2f4   :  { %v453_v42 = vpop.f32.mrb[5].mxu0  ;;  %v345_v44 = vmax.f32 %v338_v41, 0.0 }
 0x2f5   :  { %v341_v43 = vpop.f32.mrb[6].mxu0 }
 0x2f6   :  { %v346_v45 = vmax.f32 %v341_v43, 0.0  ;;  %v454_v46 = vpop.f32.mrb[7].mxu0 }
 0x2f8   :  { %v387_v47 = vpack.c.bf16 %v346_v45, %v345_v44 }
 0x2fa   :  { %388 = vst [vmem:[%s602_s5] sm:$0xff] %v387_v47  }

</bundles_post_ra>
